<compile_context>
chip_gen: v6e
topology: v6e:2x2x1
jax: 0.10.0
libtpu: 0.0.40
codegen_flags: <defaults>
</compile_context>

<pallas_src>
import jax
import jax.numpy as jnp
from jax.experimental import pallas as pl
from jax.experimental.pallas import tpu as pltpu

HIDDEN_SIZE = 1200
_VMEM_LIMIT_BYTES = 48 * 1024 * 1024  # <= v7x 64 MiB VMEM, fine on v5e/v6e


def _logreg_kernel(x_ref, w_ref, b_ref, o_ref):
    # x_ref: (TB, H) VMEM   w_ref: (H, 1) VMEM column   b_ref: (1,) SMEM f32
    # o_ref: (TB, 1) VMEM
    # MXU dot, f32 accumulate; no whole-tile upcast of x.
    logits = jnp.dot(x_ref[...], w_ref[...],
                     preferred_element_type=jnp.float32) + b_ref[0]
    # sigmoid(z) = 1 / (1 + exp(-z)); exp and approx-reciprocal both ride the
    # otherwise-idle EUP slot.
    probs = pl.reciprocal(1.0 + jnp.exp(-logits), approx=True)
    o_ref[...] = probs.astype(o_ref.dtype)


def _default_tile_cap(dtype):
    # Target ~10.5 MiB per x DMA buffer (1200 lanes pad to 1280):
    #   f32 -> 2048 rows, bf16 -> 4096 rows, fp8 -> 8192 rows.
    itemsize = jnp.dtype(dtype).itemsize
    return max(1024, (2048 * 4) // max(1, itemsize))


def _choose_tile_b(batch, tile_cap):
    """Row tile <= tile_cap, a multiple of 8 (or == batch), chosen so the grid
    has an EVEN number of steps -> balanced work across v7x's two TensorCores."""
    tile_cap = max(8, (tile_cap // 8) * 8)
    if batch <= 8:
        return batch
    n_tiles = -(-batch // tile_cap)      # tiles needed at the cap
    if n_tiles % 2:
        n_tiles += 1                     # even tile count for megacore balance
    tile_b = -(-batch // n_tiles)        # balanced rows per tile
    tile_b = ((tile_b + 7) // 8) * 8     # sublane multiple
    return min(tile_b, batch)


def logistic_regression(x, weight, bias, *, tile_b=None):
    """x: (B, H); weight: (1, H) (PyTorch nn.Linear layout); bias: (1,).

    Output dtype follows x.dtype (feed bf16 for highest throughput; cast the
    result to f32 yourself if you need f32 probabilities)."""
    B, H = x.shape
    assert weight.shape == (1, H)
    assert bias.shape == (1,)

    if tile_b is None:
        tile_b = _default_tile_cap(x.dtype)
    tile_b = _choose_tile_b(B, tile_b)
    grid = (pl.cdiv(B, tile_b),)

    # One-time tiny reshapes outside the kernel: (1, H) -> (H, 1) MXU column in
    # x's dtype (bf16 goes to the MXU natively); bias as a 32-bit SMEM scalar.
    w_col = weight.reshape(H, 1).astype(x.dtype)
    bias_f32 = bias.astype(jnp.float32)

    return pl.pallas_call(
        _logreg_kernel,
        out_shape=jax.ShapeDtypeStruct((B, 1), x.dtype),
        grid_spec=pltpu.PrefetchScalarGridSpec(
            num_scalar_prefetch=0,
            grid=grid,
            in_specs=[
                pl.BlockSpec((tile_b, H), lambda i: (i, 0)),           # x tile
                pl.BlockSpec((H, 1), lambda i: (0, 0)),                # weight col
                pl.BlockSpec(memory_space=pltpu.MemorySpace.SMEM),     # bias
            ],
            out_specs=pl.BlockSpec((tile_b, 1), lambda i: (i, 0)),
        ),
        compiler_params=pltpu.CompilerParams(
            dimension_semantics=("parallel",),   # megacore split on v7x
            vmem_limit_bytes=_VMEM_LIMIT_BYTES,
        ),
    )(x, w_col, bias_f32)


if __name__ == "__main__":
    key = jax.random.PRNGKey(0)
    kx, kw, kb = jax.random.split(key, 3)

    H = HIDDEN_SIZE
    weight = jax.random.normal(kw, (1, H), dtype=jnp.float32) * 0.02
    bias = jax.random.normal(kb, (1,), dtype=jnp.float32) * 0.02

    def ref_fn(xv, wv, bv):
        logits = jnp.dot(xv.astype(jnp.float32), wv.astype(jnp.float32).T,
                         precision=jax.lax.Precision.HIGHEST) + bv
        return jax.nn.sigmoid(logits)

    # Small shapes consistent with the module: hidden=1200 (fixed), batch=8.
    B = 8
    x = jax.random.normal(kx, (B, H), dtype=jnp.float32)
    out = jax.block_until_ready(logistic_regression(x, weight, bias))
    assert out.shape == (B, 1)
    # MXU default precision rounds f32 operands per-pass; over a 1200-wide
    # reduction that is ~1e-3 on the logit -> 2e-3 on the sigmoid output.
    assert jnp.allclose(out, ref_fn(x, weight, bias), atol=2e-3, rtol=2e-3)

    # Multi-tile grid with a masked partial final block (2000 = 3*504 + 488),
    # even tile count for the two-TC split.
    B2 = 2000
    x2 = jax.random.normal(kx, (B2, H), dtype=jnp.float32)
    out2 = jax.block_until_ready(
        logistic_regression(x2, weight, bias, tile_b=512))
    assert out2.shape == (B2, 1)
    assert jnp.allclose(out2, ref_fn(x2, weight, bias), atol=2e-3, rtol=2e-3)

    # Recommended high-throughput feed: bf16 x + bf16 weight (half the HBM
    # traffic; MXU consumes bf16 natively, f32 accumulate inside the kernel).
    # TODO(synk): evaluate an fp8 x feed on v7x if model accuracy tolerates it.
    x3 = x2.astype(jnp.bfloat16)
    w3 = weight.astype(jnp.bfloat16)
    out3 = jax.block_until_ready(logistic_regression(x3, w3, bias))
    assert out3.dtype == jnp.bfloat16
    assert jnp.allclose(out3.astype(jnp.float32), ref_fn(x3, w3, bias),
                        atol=2e-2, rtol=2e-2)

    print("KERNEL_OK")
</pallas_src>

<mosaic_0001>
module attributes {stable_mosaic.version = 11 : i64} {
  func.func @_logreg_kernel(%arg0: i32, %arg1: memref<8x1200xf32, #tpu.memory_space<vmem>>, %arg2: memref<1200x1xf32, #tpu.memory_space<vmem>>, %arg3: memref<1xf32, #tpu.memory_space<smem>>, %arg4: memref<8x1xf32, #tpu.memory_space<vmem>>) attributes {dimension_semantics = [#tpu.dimension_semantics<parallel>], iteration_bounds = array<i64: 1>, scalar_prefetch = 0 : i64, scratch_operands = 0 : i64, tpu.core_type = #tpu.core_type<tc>, window_params = [{transform_indices = @transform_0, window_bounds = array<i64: 8, 1200>}, {pipeline_mode = #tpu.pipeline_mode<synchronous>, transform_indices = @transform_1, window_bounds = array<i64: 1200, 1>}, {transform_indices = @transform_2, window_bounds = array<i64: 1>}, {transform_indices = @transform_3, window_bounds = array<i64: 8, 1>}]} {
    %c0 = arith.constant 0 : index
    %c0_0 = arith.constant 0 : index
    %0 = vector.load %arg1[%c0, %c0_0] : memref<8x1200xf32, #tpu.memory_space<vmem>>, vector<8x1200xf32>
    %c0_1 = arith.constant 0 : index
    %c0_2 = arith.constant 0 : index
    %1 = vector.load %arg2[%c0_1, %c0_2] : memref<1200x1xf32, #tpu.memory_space<vmem>>, vector<1200x1xf32>
    %cst = arith.constant dense<0.000000e+00> : vector<8x1xf32>
    %2 = tpu.matmul %0, %1, %cst {dimension_numbers = #tpu.dot_dimension_numbers<[1], [0], [0], [1], [0, 0, 1, 1], [], []>} : vector<8x1200xf32>, vector<1200x1xf32>, vector<8x1xf32> -> vector<8x1xf32>
    %c0_3 = arith.constant 0 : index
    %3 = memref.load %arg3[%c0_3] : memref<1xf32, #tpu.memory_space<smem>>
    %4 = vector.broadcast %3 : f32 to vector<8x1xf32>
    %5 = arith.addf %2, %4 : vector<8x1xf32>
    %cst_4 = arith.constant 0.000000e+00 : f32
    %6 = vector.broadcast %cst_4 : f32 to vector<8x1xf32>
    %7 = arith.subf %6, %5 : vector<8x1xf32>
    %8 = math.exp %7 : vector<8x1xf32>
    %cst_5 = arith.constant 1.000000e+00 : f32
    %9 = vector.broadcast %cst_5 : f32 to vector<8x1xf32>
    %10 = arith.addf %9, %8 : vector<8x1xf32>
    %11 = tpu.reciprocal %10 {approx = true} : vector<8x1xf32> -> vector<8x1xf32>
    %c0_6 = arith.constant 0 : index
    %c0_7 = arith.constant 0 : index
    %12 = vector.load %arg4[%c0_6, %c0_7] : memref<8x1xf32, #tpu.memory_space<vmem>>, vector<8x1xf32>
    tpu.vector_store %arg4[%c0_6, %c0_7], %11 {strides = array<i32>} : memref<8x1xf32, #tpu.memory_space<vmem>>, vector<8x1xf32>,
    return
  }
  func.func @transform_0(%arg0: i32) -> (i32, i32) {
    %c0_i32 = arith.constant 0 : i32
    %c0_i32_0 = arith.constant 0 : i32
    return %arg0, %c0_i32 : i32, i32
  }
  func.func @transform_1(%arg0: i32) -> (i32, i32) {
    %c0_i32 = arith.constant 0 : i32
    %c0_i32_0 = arith.constant 0 : i32
    %c0_i32_1 = arith.constant 0 : i32
    return %c0_i32, %c0_i32_0 : i32, i32
  }
  func.func @transform_2(%arg0: i32) -> i32 {
    %c0_i32 = arith.constant 0 : i32
    %c0_i32_0 = arith.constant 0 : i32
    return %c0_i32 : i32
  }
  func.func @transform_3(%arg0: i32) -> (i32, i32) {
    %c0_i32 = arith.constant 0 : i32
    %c0_i32_0 = arith.constant 0 : i32
    return %arg0, %c0_i32 : i32, i32
  }
}

</mosaic_0001>

<bundles_post_ra>
// kernel: tpu_custom_call.1
= control target key start
LH: loop header
LB: loop body
LE: loop exit
PB: predicated region body
PF: predicated region fallthrough
CT: control target
= control target key end

     0   :  { %vm177_vm0 = vcmask 392192   ;;  %vm536_vm1 = vcmask 7168   ;;  %s1217_s1 = inlined_call_operand.vmem [shape: f32[1200,1], index: 1, kind: input, shape index: {}]   ;;  %s1218_s0 = inlined_call_operand.vmem [shape: f32[8,1200], index: 0, kind: input, shape index: {}]   ;;  %s1219_s2 = inlined_call_operand.<no memory space> [shape: f32[1], index: 2, kind: input, shape index: {}]   ;;  %s1220_s3 = inlined_call_operand.vmem [shape: f32[8,1], index: 3, kind: output, shape index: {}]  }
   0x1   :  { %v56_v0 = vld [vmem:[%s1217_s1 + $0xf8] sm:$0xff]  ;;  %v55_v2 = vld [vmem:[%s1217_s1 + $0xf0] sm:$0xff]  ;;  %v54_v4 = vld [vmem:[%s1217_s1 + $0xe8] sm:$0xff] }
   0x2   :  { %v40_v1 = vld [vmem:[%s1217_s1 + $0x78] sm:$0xff]  ;;  %543 = vmatprep.subr.mxu1 %v56_v0  ;;  %v39_v3 = vld [vmem:[%s1217_s1 + $0x70] sm:$0xff]  ;;  %v38_v5 = vld [vmem:[%s1217_s1 + $0x68] sm:$0xff] }
   0x3   :  { %544 = vmatpush3.msra.mxu1 %v40_v1  ;;  %v53_v6 = vld [vmem:[%s1217_s1 + $0xe0] sm:$0xff]  ;;  %v52_v8 = vld [vmem:[%s1217_s1 + $0xd8] sm:$0xff]  ;;  %v51_v10 = vld [vmem:[%s1217_s1 + $0xd0] sm:$0xff] }
   0x4   :  { %545 = vmatprep.subr.mxu1 %v55_v2  ;;  %v37_v7 = vld [vmem:[%s1217_s1 + $0x60] sm:$0xff]  ;;  %v36_v9 = vld [vmem:[%s1217_s1 + $0x58] sm:$0xff]  ;;  %v35_v12 = vld [vmem:[%s1217_s1 + $0x50] sm:$0xff] }
   0x5   :  { %546 = vmatpush3.msra.mxu1 %v39_v3  ;;  %v120_v11 = vld [vmem:[%s1217_s1 + $0x2f8] sm:$0xff]  ;;  %v119_v14 = vld [vmem:[%s1217_s1 + $0x2f0] sm:$0xff]  ;;  %v50_v15 = vld [vmem:[%s1217_s1 + $0xc8] sm:$0xff] }
   0x6   :  { %547 = vmatprep.subr.mxu1 %v54_v4  ;;  %613 = vmatprep.subr.mxu0 %v120_v11  ;;  %v104_v13 = vld [vmem:[%s1217_s1 + $0x278] sm:$0xff]  ;;  %v103_v16 = vld [vmem:[%s1217_s1 + $0x270] sm:$0xff]  ;;  %v34_v17 = vld [vmem:[%s1217_s1 + $0x48] sm:$0xff] }
   0x7   :  { %548 = vmatpush3.msra.mxu1 %v38_v5  ;;  %614 = vmatpush3.msra.mxu0 %v104_v13  ;;  %v118_v18 = vld [vmem:[%s1217_s1 + $0x2e8] sm:$0xff]  ;;  %v49_v20 = vld [vmem:[%s1217_s1 + $0xc0] sm:$0xff]  ;;  %v48_v24 = vld [vmem:[%s1217_s1 + $0xb8] sm:$0xff] }
   0x8   :  { %549 = vmatprep.subr.mxu1 %v53_v6  ;;  %615 = vmatprep.subr.mxu0 %v119_v14  ;;  %v102_v19 = vld [vmem:[%s1217_s1 + $0x268] sm:$0xff]  ;;  %v117_v21 = vld [vmem:[%s1217_s1 + $0x2e0] sm:$0xff]  ;;  %v32_v26 = vld [vmem:[%s1217_s1 + $0x38] sm:$0xff] }
   0x9   :  { %550 = vmatpush3.msra.mxu1 %v37_v7  ;;  %616 = vmatpush3.msra.mxu0 %v103_v16  ;;  %v33_v22 = vld [vmem:[%s1217_s1 + $0x40] sm:$0xff]  ;;  %v16_v23 = vld [vmem:[%s1218_s0 + $0x8] sm:$0xff]  ;;  %v116_v27 = vld [vmem:[%s1217_s1 + $0x2d8] sm:$0xff] }
   0xa   :  { %551 = vmatprep.subr.mxu1 %v52_v8  ;;  %617 = vmatprep.subr.mxu0 %v118_v18  ;;  %v101_v25 = vld [vmem:[%s1217_s1 + $0x260] sm:$0xff]  ;;  %v47_v28 = vld [vmem:[%s1217_s1 + $0xb0] sm:$0xff]  ;;  %v100_v29 = vld [vmem:[%s1217_s1 + $0x258] sm:$0xff] }
   0xb   :  { %552 = vmatpush3.msra.mxu1 %v36_v9  ;;  %618 = vmatpush3.msra.mxu0 %v102_v19  ;;  %v31_v30 = vld [vmem:[%s1217_s1 + $0x30] sm:$0xff]  ;;  %v46_v32 = vld [vmem:[%s1217_s1 + $0xa8] sm:$0xff]  ;;  %v45_v36 = vld [vmem:[%s1217_s1 + $0xa0] sm:$0xff] }
   0xc   :  { %553 = vmatprep.subr.mxu1 %v51_v10  ;;  %619 = vmatprep.subr.mxu0 %v117_v21  ;;  %v115_v31 = vld [vmem:[%s1217_s1 + $0x2d0] sm:$0xff]  ;;  %v30_v34 = vld [vmem:[%s1217_s1 + $0x28] sm:$0xff]  ;;  %v29_v38 = vld [vmem:[%s1217_s1 + $0x20] sm:$0xff] }
   0xd   :  { %554 = vmatpush3.msra.mxu1 %v35_v12  ;;  %245 = vmatprep.mubr.f32.mxu1 %v16_v23  ;;  %v99_v33 = vld [vmem:[%s1217_s1 + $0x250] sm:$0xff]  ;;  %v114_v35 = vld [vmem:[%s1217_s1 + $0x2c8] sm:$0xff]  ;;  %v113_v39 = vld [vmem:[%s1217_s1 + $0x2c0] sm:$0xff] }
   0xe   :  { %555 = vmatprep.subr.mxu1 %v50_v15  ;;  %620 = vmatpush3.msra.mxu0 %v101_v25  ;;  %v98_v37 = vld [vmem:[%s1217_s1 + $0x248] sm:$0xff]  ;;  %v44_v40 = vld [vmem:[%s1217_s1 + $0x98] sm:$0xff]  ;;  %v97_v41 = vld [vmem:[%s1217_s1 + $0x240] sm:$0xff] }
   0xf   :  { %556 = vmatpush3.msra.mxu1 %v34_v17  ;;  %621 = vmatprep.subr.mxu0 %v116_v27  ;;  %v28_v42 = vld [vmem:[%s1217_s1 + $0x18] sm:$0xff]  ;;  %v43_v44 = vld [vmem:[%s1217_s1 + $0x90] sm:$0xff]  ;;  %v42_v48 = vld [vmem:[%s1217_s1 + $0x88] sm:$0xff] }
  0x10   :  { %557 = vmatprep.subr.mxu1 %v49_v20  ;;  %622 = vmatpush3.msra.mxu0 %v100_v29  ;;  %v112_v43 = vld [vmem:[%s1217_s1 + $0x2b8] sm:$0xff]  ;;  %v27_v46 = vld [vmem:[%s1217_s1 + $0x10] sm:$0xff]  ;;  %v26_v50 = vld [vmem:[%s1217_s1 + $0x8] sm:$0xff]  ;;  %v688_v20 = vmov 0.0  }
  0x11   :  { %558 = vmatpush3.msra.mxu1 %v33_v22  ;;  %623 = vmatprep.subr.mxu0 %v115_v31  ;;  %v96_v45 = vld [vmem:[%s1217_s1 + $0x238] sm:$0xff]  ;;  %v111_v47 = vld [vmem:[%s1217_s1 + $0x2b0] sm:$0xff]  ;;  %v110_v51 = vld [vmem:[%s1217_s1 + $0x2a8] sm:$0xff] }
  0x12   :  { %559 = vmatprep.subr.mxu1 %v48_v24  ;;  %624 = vmatpush3.msra.mxu0 %v99_v33  ;;  %v95_v49 = vld [vmem:[%s1217_s1 + $0x230] sm:$0xff]  ;;  %v41_v52 = vld [vmem:[%s1217_s1 + $0x80] sm:$0xff]  ;;  %v94_v53 = vld [vmem:[%s1217_s1 + $0x228] sm:$0xff] }
  0x13   :  { %560 = vmatpush3.msra.mxu1 %v32_v26  ;;  %625 = vmatprep.subr.mxu0 %v114_v35  ;;  %v25_v54 = vld [vmem:[%s1217_s1] sm:$0xff]  ;;  %v88_v57 = vld [vmem:[%s1217_s1 + $0x1f8] sm:$0xff]  ;;  %v87_v60 = vld [vmem:[%s1217_s1 + $0x1f0] sm:$0xff] }
  0x14   :  { %561 = vmatprep.subr.mxu1 %v47_v28  ;;  %626 = vmatpush3.msra.mxu0 %v98_v37  ;;  %v109_v55 = vld [vmem:[%s1217_s1 + $0x2a0] sm:$0xff]  ;;  %v72_v58 = vld [vmem:[%s1217_s1 + $0x178] sm:$0xff]  ;;  %v71_v62 = vld [vmem:[%s1217_s1 + $0x170] sm:$0xff] }
  0x15   :  { %562 = vmatpush3.msra.mxu1 %v31_v30  ;;  %627 = vmatprep.subr.mxu0 %v113_v39  ;;  %v15_v56 = vld [vmem:[%s1218_s0] sm:$0xff]  ;;  %v108_v61 = vld [vmem:[%s1217_s1 + $0x298] sm:$0xff]  ;;  %v86_v0 = vld [vmem:[%s1217_s1 + $0x1e8] sm:$0xff] }
  0x16   :  { %563 = vmatprep.subr.mxu1 %v46_v32  ;;  %628 = vmatpush3.msra.mxu0 %v97_v41  ;;  %v93_v59 = vld [vmem:[%s1217_s1 + $0x220] sm:$0xff]  ;;  %v92_v63 = vld [vmem:[%s1217_s1 + $0x218] sm:$0xff]  ;;  %v107_v1 = vld [vmem:[%s1217_s1 + $0x290] sm:$0xff] }
  0x17   :  { %564 = vmatpush3.msra.mxu1 %v30_v34  ;;  %629 = vmatprep.subr.mxu0 %v112_v43  ;;  %v70_v2 = vld [vmem:[%s1217_s1 + $0x168] sm:$0xff]  ;;  %v91_v3 = vld [vmem:[%s1217_s1 + $0x210] sm:$0xff]  ;;  %v85_v4 = vld [vmem:[%s1217_s1 + $0x1e0] sm:$0xff] }
  0x18   :  { %565 = vmatprep.subr.mxu1 %v45_v36  ;;  %630 = vmatpush3.msra.mxu0 %v96_v45  ;;  %v106_v5 = vld [vmem:[%s1217_s1 + $0x288] sm:$0xff]  ;;  %v69_v6 = vld [vmem:[%s1217_s1 + $0x160] sm:$0xff]  ;;  %v84_v8 = vld [vmem:[%s1217_s1 + $0x1d8] sm:$0xff] }
  0x19   :  { %566 = vmatpush3.msra.mxu1 %v29_v38  ;;  %631 = vmatprep.subr.mxu0 %v111_v47  ;;  %v90_v7 = vld [vmem:[%s1217_s1 + $0x208] sm:$0xff]  ;;  %v105_v9 = vld [vmem:[%s1217_s1 + $0x280] sm:$0xff]  ;;  %v68_v10 = vld [vmem:[%s1217_s1 + $0x158] sm:$0xff] }
  0x1a   :  { %567 = vmatprep.subr.mxu1 %v44_v40  ;;  %632 = vmatpush3.msra.mxu0 %v95_v49  ;;  %v89_v11 = vld [vmem:[%s1217_s1 + $0x200] sm:$0xff]  ;;  %v83_v12 = vld [vmem:[%s1217_s1 + $0x1d0] sm:$0xff]  ;;  %v20_v13 = vld [vmem:[%s1218_s0 + $0x28] sm:$0xff] }
  0x1b   :  { %568 = vmatpush3.msra.mxu1 %v28_v42  ;;  %633 = vmatprep.subr.mxu0 %v110_v51  ;;  %v67_v14 = vld [vmem:[%s1217_s1 + $0x150] sm:$0xff]  ;;  %v82_v15 = vld [vmem:[%s1217_s1 + $0x1c8] sm:$0xff]  ;;  %v19_v16 = vld [vmem:[%s1218_s0 + $0x20] sm:$0xff] }
  0x1c   :  { %569 = vmatprep.subr.mxu1 %v43_v44  ;;  %634 = vmatpush3.msra.mxu0 %v94_v53  ;;  %v66_v17 = vld [vmem:[%s1217_s1 + $0x148] sm:$0xff]  ;;  %v168_v18 = vld [vmem:[%s1217_s1 + $0x478] sm:$0xff]  ;;  %v81_v19 = vld [vmem:[%s1217_s1 + $0x1c0] sm:$0xff] }
  0x1d   :  { %570 = vmatpush3.msra.mxu1 %v27_v46  ;;  %635 = vmatprep.subr.mxu0 %v109_v55  ;;  %v65_v21 = vld [vmem:[%s1217_s1 + $0x140] sm:$0xff]  ;;  %v167_v22 = vld [vmem:[%s1217_s1 + $0x470] sm:$0xff]  ;;  %v80_v23 = vld [vmem:[%s1217_s1 + $0x1b8] sm:$0xff] }
  0x1e   :  { %571 = vmatprep.subr.mxu1 %v42_v48  ;;  %636 = vmatpush3.msra.mxu0 %v93_v59  ;;  %v64_v24 = vld [vmem:[%s1217_s1 + $0x138] sm:$0xff]  ;;  %v166_v25 = vld [vmem:[%s1217_s1 + $0x468] sm:$0xff]  ;;  %v79_v26 = vld [vmem:[%s1217_s1 + $0x1b0] sm:$0xff] }
  0x1f   :  { %572 = vmatpush3.msra.mxu1 %v26_v50  ;;  %637 = vmatprep.subr.mxu0 %v108_v61  ;;  %v63_v27 = vld [vmem:[%s1217_s1 + $0x130] sm:$0xff]  ;;  %v18_v28 = vld [vmem:[%s1218_s0 + $0x18] sm:$0xff]  ;;  %v78_v29 = vld [vmem:[%s1217_s1 + $0x1a8] sm:$0xff] }
  0x20   :  { %573 = vmatprep.subr.mxu1 %v41_v52  ;;  %638 = vmatpush3.msra.mxu0 %v92_v63  ;;  %v165_v30 = vld [vmem:[%s1217_s1 + $0x460] sm:$0xff]  ;;  %v62_v31 = vld [vmem:[%s1217_s1 + $0x128] sm:$0xff]  ;;  %v164_v33 = vld [vmem:[%s1217_s1 + $0x458] sm:$0xff] }
  0x21   :  { %574 = vmatpush3.msra.mxu1 %v25_v54  ;;  %639 = vmatprep.subr.mxu0 %v107_v1  ;;  %v77_v32 = vld [vmem:[%s1217_s1 + $0x1a0] sm:$0xff]  ;;  %v76_v35 = vld [vmem:[%s1217_s1 + $0x198] sm:$0xff]  ;;  %v163_v36 = vld [vmem:[%s1217_s1 + $0x450] sm:$0xff] }
  0x22   :  { %246 = vmatmul.mubr.f32.vlgmr.msra.gmra.mxu1 %v15_v56  ;;  %578 = vmatprep.subr.mxu1 %v88_v57  ;;  %v61_v34 = vld [vmem:[%s1217_s1 + $0x120] sm:$0xff]  ;;  %v60_v37 = vld [vmem:[%s1217_s1 + $0x118] sm:$0xff]  ;;  %v75_v38 = vld [vmem:[%s1217_s1 + $0x190] sm:$0xff] }
  0x23   :  { %579 = vmatpush3.msra.mxu1 %v72_v58  ;;  %640 = vmatpush3.msra.mxu0 %v91_v3  ;;  %v162_v39 = vld [vmem:[%s1217_s1 + $0x448] sm:$0xff]  ;;  %v59_v40 = vld [vmem:[%s1217_s1 + $0x110] sm:$0xff]  ;;  %v161_v42 = vld [vmem:[%s1217_s1 + $0x440] sm:$0xff] }
  0x24   :  { %580 = vmatprep.subr.mxu1 %v87_v60  ;;  %641 = vmatprep.subr.mxu0 %v106_v5  ;;  %v74_v41 = vld [vmem:[%s1217_s1 + $0x188] sm:$0xff]  ;;  %v73_v44 = vld [vmem:[%s1217_s1 + $0x180] sm:$0xff]  ;;  %v160_v45 = vld [vmem:[%s1217_s1 + $0x438] sm:$0xff] }
  0x25   :  { %581 = vmatpush3.msra.mxu1 %v71_v62  ;;  %642 = vmatpush3.msra.mxu0 %v90_v7  ;;  %v58_v43 = vld [vmem:[%s1217_s1 + $0x108] sm:$0xff]  ;;  %v57_v46 = vld [vmem:[%s1217_s1 + $0x100] sm:$0xff]  ;;  %v17_v47 = vld [vmem:[%s1218_s0 + $0x10] sm:$0xff] }
  0x26   :  { %582 = vmatprep.subr.mxu1 %v86_v0  ;;  %643 = vmatprep.subr.mxu0 %v105_v9  ;;  %v152_v48 = vld [vmem:[%s1217_s1 + $0x3f8] sm:$0xff]  ;;  %v159_v50 = vld [vmem:[%s1217_s1 + $0x430] sm:$0xff]  ;;  %v158_v53 = vld [vmem:[%s1217_s1 + $0x428] sm:$0xff] }
  0x27   :  { %583 = vmatpush3.msra.mxu1 %v70_v2  ;;  %644 = vmatpush3.msra.mxu0 %v89_v11  ;;  %v136_v49 = vld [vmem:[%s1217_s1 + $0x378] sm:$0xff]  ;;  %v151_v51 = vld [vmem:[%s1217_s1 + $0x3f0] sm:$0xff]  ;;  %v150_v54 = vld [vmem:[%s1217_s1 + $0x3e8] sm:$0xff] }
  0x28   :  { %584 = vmatprep.subr.mxu1 %v85_v4  ;;  %385 = vmatprep.mubr.f32.mxu0 %v20_v13  ;;  %v135_v52 = vld [vmem:[%s1217_s1 + $0x370] sm:$0xff]  ;;  %v134_v55 = vld [vmem:[%s1217_s1 + $0x368] sm:$0xff]  ;;  %v157_v56 = vld [vmem:[%s1217_s1 + $0x420] sm:$0xff] }
  0x29   :  { %585 = vmatpush3.msra.mxu1 %v69_v6  ;;  %461 = vmatprep.subr.mxu0 %v688_v20  ;;  %v149_v57 = vld [vmem:[%s1217_s1 + $0x3e0] sm:$0xff]  ;;  %v156_v59 = vld [vmem:[%s1217_s1 + $0x418] sm:$0xff]  ;;  %v155_v62 = vld [vmem:[%s1217_s1 + $0x410] sm:$0xff] }
  0x2a   :  { %586 = vmatprep.subr.mxu1 %v84_v8  ;;  %386 = vmatmul.mubr.f32.vlgmr.msra.gmra.mxu0 %v19_v16  ;;  %v133_v58 = vld [vmem:[%s1217_s1 + $0x360] sm:$0xff]  ;;  %v148_v60 = vld [vmem:[%s1217_s1 + $0x3d8] sm:$0xff]  ;;  %v147_v63 = vld [vmem:[%s1217_s1 + $0x3d0] sm:$0xff] }
  0x2b   :  { %587 = vmatpush3.msra.mxu1 %v68_v10  ;;  %462 = vmatpush1.msra.mxu0 %v168_v18  ;;  %v132_v61 = vld [vmem:[%s1217_s1 + $0x358] sm:$0xff]  ;;  %v131_v0 = vld [vmem:[%s1217_s1 + $0x350] sm:$0xff]  ;;  %v154_v1 = vld [vmem:[%s1217_s1 + $0x408] sm:$0xff] }
  0x2c   :  { %588 = vmatprep.subr.mxu1 %v83_v12  ;;  %463 = vmatprep.subr.mxu0 %v688_v20  ;;  %v146_v2 = vld [vmem:[%s1217_s1 + $0x3c8] sm:$0xff]  ;;  %v153_v4 = vld [vmem:[%s1217_s1 + $0x400] sm:$0xff]  ;;  %v144_v8 = vld [vmem:[%s1217_s1 + $0x3b8] sm:$0xff] }
  0x2d   :  { %589 = vmatpush3.msra.mxu1 %v67_v14  ;;  %464 = vmatpush1.msra.mxu0 %v167_v22  ;;  %v130_v3 = vld [vmem:[%s1217_s1 + $0x348] sm:$0xff]  ;;  %v145_v5 = vld [vmem:[%s1217_s1 + $0x3c0] sm:$0xff]  ;;  %v128_v9 = vld [vmem:[%s1217_s1 + $0x338] sm:$0xff] }
  0x2e   :  { %590 = vmatprep.subr.mxu1 %v82_v15  ;;  %465 = vmatprep.subr.mxu0 %v688_v20  ;;  %v129_v6 = vld [vmem:[%s1217_s1 + $0x340] sm:$0xff]  ;;  %v174_v7 = vld [vmem:[%s1217_s1 + $0x4a8] sm:$0xff]  ;;  %v143_v11 = vld [vmem:[%s1217_s1 + $0x3b0] sm:$0xff] }
  0x2f   :  { %591 = vmatpush3.msra.mxu1 %v66_v17  ;;  %466 = vmatpush1.msra.mxu0 %v166_v25  ;;  %v173_v10 = vld [vmem:[%s1217_s1 + $0x4a0] sm:$0xff]  ;;  %v127_v12 = vld [vmem:[%s1217_s1 + $0x330] sm:$0xff]  ;;  %v172_v13 = vld [vmem:[%s1217_s1 + $0x498] sm:$0xff] }
  0x30   :  { %592 = vmatprep.subr.mxu1 %v81_v19  ;;  %467 = vmatprep.subr.mxu0 %v688_v20  ;;  %v142_v14 = vld [vmem:[%s1217_s1 + $0x3a8] sm:$0xff]  ;;  %v22_v16 = vld [vmem:[%s1218_s0 + $0x38] sm:$0xff]  ;;  %v141_v17 = vld [vmem:[%s1217_s1 + $0x3a0] sm:$0xff] }
  0x31   :  { %593 = vmatpush3.msra.mxu1 %v65_v21  ;;  %315 = vmatprep.mubr.f32.mxu1 %v18_v28  ;;  %v126_v15 = vld [vmem:[%s1217_s1 + $0x328] sm:$0xff]  ;;  %v171_v18 = vld [vmem:[%s1217_s1 + $0x490] sm:$0xff]  ;;  %v125_v19 = vld [vmem:[%s1217_s1 + $0x320] sm:$0xff] }
  0x32   :  { %594 = vmatprep.subr.mxu1 %v80_v23  ;;  %468 = vmatpush1.msra.mxu0 %v165_v30  ;;  %v140_v21 = vld [vmem:[%s1217_s1 + $0x398] sm:$0xff]  ;;  %v170_v22 = vld [vmem:[%s1217_s1 + $0x488] sm:$0xff]  ;;  %v169_v25 = vld [vmem:[%s1217_s1 + $0x480] sm:$0xff] }
  0x33   :  { %595 = vmatpush3.msra.mxu1 %v64_v24  ;;  %469 = vmatprep.subr.mxu0 %v688_v20  ;;  %v124_v23 = vld [vmem:[%s1217_s1 + $0x318] sm:$0xff]  ;;  %v139_v24 = vld [vmem:[%s1217_s1 + $0x390] sm:$0xff]  ;;  %v138_v28 = vld [vmem:[%s1217_s1 + $0x388] sm:$0xff] }
  0x34   :  { %596 = vmatprep.subr.mxu1 %v79_v26  ;;  %470 = vmatpush1.msra.mxu0 %v164_v33  ;;  %v123_v26 = vld [vmem:[%s1217_s1 + $0x310] sm:$0xff]  ;;  %v122_v30 = vld [vmem:[%s1217_s1 + $0x308] sm:$0xff] }
  0x35   :  { %597 = vmatpush3.msra.mxu1 %v63_v27  ;;  %471 = vmatprep.subr.mxu0 %v688_v20  ;;  %v24_v27 = vld [vmem:[%s1218_s0 + $0x48] sm:$0xff] }
  0x36   :  { %598 = vmatprep.subr.mxu1 %v78_v29  ;;  %472 = vmatpush1.msra.mxu0 %v163_v36  ;;  %v23_v29 = vld [vmem:[%s1218_s0 + $0x40] sm:$0xff] }
  0x37   :  { %599 = vmatpush3.msra.mxu1 %v62_v31  ;;  %473 = vmatprep.subr.mxu0 %v688_v20  ;;  %v137_v31 = vld [vmem:[%s1217_s1 + $0x380] sm:$0xff] }
  0x38   :  { %600 = vmatprep.subr.mxu1 %v77_v32  ;;  %474 = vmatpush1.msra.mxu0 %v162_v39  ;;  %v21_v32 = vld [vmem:[%s1218_s0 + $0x30] sm:$0xff]  ;;  %v176_v39 = vstv %s1219_s2 }
  0x39   :  { %601 = vmatpush3.msra.mxu1 %v61_v34  ;;  %475 = vmatprep.subr.mxu0 %v688_v20 }
  0x3a   :  { %602 = vmatprep.subr.mxu1 %v76_v35  ;;  %476 = vmatpush1.msra.mxu0 %v161_v42 }
  0x3b   :  { %603 = vmatpush3.msra.mxu1 %v60_v37  ;;  %477 = vmatprep.subr.mxu0 %v688_v20 }
  0x3c   :  { %604 = vmatprep.subr.mxu1 %v75_v38  ;;  %478 = vmatpush1.msra.mxu0 %v160_v45 }
  0x3d   :  { %605 = vmatpush3.msra.mxu1 %v59_v40  ;;  %479 = vmatprep.subr.mxu0 %v688_v20 }
  0x3e   :  { %606 = vmatprep.subr.mxu1 %v74_v41  ;;  %480 = vmatpush1.msra.mxu0 %v159_v50 }
  0x3f   :  { %607 = vmatpush3.msra.mxu1 %v58_v43  ;;  %481 = vmatprep.subr.mxu0 %v688_v20 }
  0x40   :  { %608 = vmatprep.subr.mxu1 %v73_v44  ;;  %482 = vmatpush1.msra.mxu0 %v158_v53 }
  0x41   :  { %609 = vmatpush3.msra.mxu1 %v57_v46  ;;  %483 = vmatprep.subr.mxu0 %v688_v20 }
  0x42   :  { %316 = vmatmul.mubr.f32.vlgmr.msra.gmra.mxu1 %v17_v47  ;;  %648 = vmatprep.subr.mxu1 %v152_v48 }
  0x43   :  { %649 = vmatpush3.msra.mxu1 %v136_v49  ;;  %484 = vmatpush1.msra.mxu0 %v157_v56 }
  0x44   :  { %650 = vmatprep.subr.mxu1 %v151_v51  ;;  %485 = vmatprep.subr.mxu0 %v688_v20 }
  0x45   :  { %651 = vmatpush3.msra.mxu1 %v135_v52  ;;  %486 = vmatpush1.msra.mxu0 %v156_v59 }
  0x46   :  { %652 = vmatprep.subr.mxu1 %v150_v54  ;;  %487 = vmatprep.subr.mxu0 %v688_v20 }
  0x47   :  { %653 = vmatpush3.msra.mxu1 %v134_v55  ;;  %488 = vmatpush1.msra.mxu0 %v155_v62 }
  0x48   :  { %654 = vmatprep.subr.mxu1 %v149_v57  ;;  %489 = vmatprep.subr.mxu0 %v688_v20 }
  0x49   :  { %655 = vmatpush3.msra.mxu1 %v133_v58  ;;  %490 = vmatpush1.msra.mxu0 %v154_v1 }
  0x4a   :  { %656 = vmatprep.subr.mxu1 %v148_v60  ;;  %491 = vmatprep.subr.mxu0 %v688_v20 }
  0x4b   :  { %657 = vmatpush3.msra.mxu1 %v132_v61  ;;  %492 = vmatpush1.msra.mxu0 %v153_v4 }
  0x4c   :  { %658 = vmatprep.subr.mxu1 %v147_v63  ;;  %513 = vmatprep.subr.mxu0 %v688_v20 }
  0x4d   :  { %659 = vmatpush3.msra.mxu1 %v131_v0  ;;  %514 = vmatpush2.msra.mxu0 %v174_v7 }
  0x4e   :  { %660 = vmatprep.subr.mxu1 %v146_v2  ;;  %515 = vmatprep.subr.mxu0 %v688_v20 }
  0x4f   :  { %661 = vmatpush3.msra.mxu1 %v130_v3  ;;  %516 = vmatpush2.msra.mxu0 %v173_v10 }
  0x50   :  { %662 = vmatprep.subr.mxu1 %v145_v5  ;;  %517 = vmatprep.subr.mxu0 %v688_v20 }
  0x51   :  { %663 = vmatpush3.msra.mxu1 %v129_v6  ;;  %518 = vmatpush2.msra.mxu0 %v172_v13 }
  0x52   :  { %664 = vmatprep.subr.mxu1 %v144_v8  ;;  %519 = vmatprep.subr.mxu0 %v688_v20 }
  0x53   :  { %665 = vmatpush3.msra.mxu1 %v128_v9  ;;  %455 = vmatprep.mubr.f32.mxu1 %v22_v16 }
  0x54   :  { %666 = vmatprep.subr.mxu1 %v143_v11  ;;  %520 = vmatpush2.msra.mxu0 %v171_v18 }
  0x55   :  { %667 = vmatpush3.msra.mxu1 %v127_v12  ;;  %521 = vmatprep.subr.mxu0 %v688_v20 }
  0x56   :  { %668 = vmatprep.subr.mxu1 %v142_v14  ;;  %522 = vmatpush2.msra.mxu0 %v170_v22 }
  0x57   :  { %669 = vmatpush3.msra.mxu1 %v126_v15  ;;  %523 = vmatprep.subr.mxu0 %v688_v20  ;;  %v121_v20 = vld [vmem:[%s1217_s1 + $0x300] sm:$0xff] }
  0x58   :  { %670 = vmatprep.subr.mxu1 %v141_v17  ;;  %524 = vmatpush2.msra.mxu0 %v169_v25 }
  0x59   :  { %671 = vmatpush3.msra.mxu1 %v125_v19  ;;  %542 = vmatprep.mubr.msk.f32.mxu0 %vm177_vm0, %v24_v27 }
  0x5a   :  { %672 = vmatprep.subr.mxu1 %v140_v21  ;;  %526 = vmatmul.mubr.f32.vlgmr.msra.gmra.mxu0 %v23_v29 }
  0x5b   :  { %673 = vmatpush3.msra.mxu1 %v124_v23 }
  0x5c   :  { %674 = vmatprep.subr.mxu1 %v139_v24 }
  0x5d   :  { %675 = vmatpush3.msra.mxu1 %v123_v26 }
  0x5e   :  { %676 = vmatprep.subr.mxu1 %v138_v28 }
  0x5f   :  { %677 = vmatpush3.msra.mxu1 %v122_v30 }
  0x60   :  { %678 = vmatprep.subr.mxu1 %v137_v31 }
  0x61   :  { %679 = vmatpush3.msra.mxu1 %v121_v20 }
  0x62   :  { %456 = vmatmul.mubr.f32.vlgmr.msra.gmra.mxu1 %v21_v32 }
  0xe2   :  { %v575_v33 = vpop.f32.mrf.mxu1 }
  0xe4   :  { %v576_v34 = vpop.f32.mrf.mxu1 }
  0xe5   :  { %v577_v38 = vadd.f32 %v576_v34, %v575_v33 }
  0xe7   :  { %v248_v43 = vadd.f32 %v577_v38, %v176_v39 }
  0xea   :  { %v645_v36 = vpop.f32.mrf.mxu0 }
  0xec   :  { %v646_v40 = vpop.f32.mrf.mxu0 }
  0xed   :  { %v647_v47 = vadd.f32 %v646_v40, %v645_v36 }
 0x102   :  { %v610_v35 = vpop.f32.mrf.mxu1 }
 0x104   :  { %v611_v37 = vpop.f32.mrf.mxu1 }
 0x105   :  { %v612_v41 = vadd.f32 %v611_v37, %v610_v35 }
 0x107   :  { %v318_v45 = vadd.f32 %v612_v41, %v248_v43 }
 0x109   :  { %v388_v50 = vadd.f32 %v647_v47, %v318_v45 }
 0x11a   :  { %v527_v42 = vpop.f32.mrf.mxu0 }
 0x11c   :  { %v529_v44 = vpop.f32.mrf.mxu0 }
 0x122   :  { %v680_v46 = vpop.f32.mrf.mxu1 }
 0x124   :  { %v681_v48 = vpop.f32.mrf.mxu1 }
 0x125   :  { %v682_v49 = vadd.f32 %v681_v48, %v680_v46 }
 0x127   :  { %v458_v51 = vadd.f32 %v682_v49, %v388_v50 }
 0x129   :  { %v528_v52 = vadd.f32 %v527_v42, %v458_v51 }
 0x12b   :  { %v531_v53 = vsub.f32 0.0, %v528_v52 }
 0x12d   :  { %v532_v54 = vmul.f32 1.442695, %v531_v53 }
 0x12f   :  { %684 = vpow2.f32 %v532_v54 }
 0x13c   :  { %v685_v55 = vpop.eup %684 }
 0x13d   :  { %v534_v56 = vadd.f32 1.0, %v685_v55 }
 0x13f   :  { %686 = vrcp.f32 %v534_v56 }
 0x14c   :  { %v687_v57 = vpop.eup %686 }
 0x14d   :  { %537 = vst.msk [vmem:[%s1220_s3] sm:$0xff] %vm536_vm1, %v687_v57 }

</bundles_post_ra>
